<compile_context>
chip_gen: v7x
topology: tpu7x:2x2x1
jax: 0.10.0
libtpu: 0.0.40
codegen_flags: <defaults>
</compile_context>

<pallas_src>
import functools

import jax
import jax.numpy as jnp
import numpy as np
from jax.experimental import pallas as pl
from jax.experimental.pallas import tpu as pltpu


def _multi_tensorcore_chip():
    """True on chips with >1 TensorCore per chip (v4 megacore, v7x)."""
    try:
        kind = jax.devices()[0].device_kind.lower()
    except Exception:  # pragma: no cover - defensive; fall back to single-TC
        return False
    return any(tag in kind for tag in ("v4", "v7"))


def _convblock_kernel(p_ref, w_ref, par_ref, o_ref, *, eps, hw_valid, hwp, nb):
    # p_ref  : (Kp, nb*HWp)  im2col patches (bf16 or f32, zero-padded rows/lanes)
    # w_ref  : (Cout, Kp)    conv weight, same dtype as patches
    # par_ref: (Cout, 3)     f32 [:,0]=gamma, [:,1]=beta, [:,2]=conv bias
    # o_ref  : (Cout, nb*HWp) lane-dense output tile
    cout = o_ref.shape[0]

    # Single fused contraction on the MXU; f32 accumulation regardless of
    # operand dtype (operands are already the right dtype -> no in-kernel cast).
    y = jax.lax.dot_general(
        w_ref[...], p_ref[...], (((1,), (0,)), ((), ())),
        preferred_element_type=jnp.float32,
    )  # (Cout, nb*HWp) f32

    gamma = par_ref[:, 0:1]   # (Cout, 1), broadcasts along lanes
    beta = par_ref[:, 1:2]
    bias = par_ref[:, 2:3]
    y = y + bias              # conv bias stays f32 even on the bf16 operand path

    count = float(cout) * float(hw_valid)
    masked = hwp != hw_valid  # static branch: Ho*Wo not a multiple of 128
    if masked:
        col = jax.lax.broadcasted_iota(jnp.int32, (cout, hwp), 1)
        valid = col < hw_valid

    # GroupNorm(num_groups=1): per-sample stats over Cout*Ho*Wo, one sample per
    # lane-tile-aligned HWp segment (static slices -> no relayout).
    for s in range(nb):
        lo = s * hwp
        seg = y[:, lo:lo + hwp]                              # (Cout, HWp)
        seg_for_sum = jnp.where(valid, seg, 0.0) if masked else seg
        mean = jnp.sum(seg_for_sum) / count
        centered = seg - mean
        c_stats = jnp.where(valid, centered, 0.0) if masked else centered
        var = jnp.sum(c_stats * c_stats) / count             # two-pass (centered)
        inv = jax.lax.rsqrt(var + eps)                       # EUP path
        out_seg = jnp.maximum(centered * inv * gamma + beta, 0.0)   # affine + ReLU
        o_ref[:, lo:lo + hwp] = out_seg.astype(o_ref.dtype)


def conv_block_forward(x_nchw, conv_w, conv_b, gn_w, gn_b, *, padding, eps=1e-5,
                       use_bf16_matmul=True, batch_grid=None):
    """x_nchw: (N, Cin, H, W); conv_w: (Cout, Cin, KH, KW) -> (N, Cout, Ho, Wo)."""
    n, cin, h, w = x_nchw.shape
    cout, cin_w, kh, kw = conv_w.shape
    assert cin_w == cin, "grouped convolution not supported (groups=1 only)"
    ho = h + 2 * padding - kh + 1
    wo = w + 2 * padding - kw + 1
    hw = ho * wo
    hwp = ((hw + 127) // 128) * 128            # lane-dense spatial extent / sample

    if batch_grid is None:
        # Per-sample grid only pays off when grid steps shard across TCs.
        batch_grid = (n > 1) and _multi_tensorcore_chip()

    op_dtype = jnp.bfloat16 if use_bf16_matmul else jnp.float32
    sublane = 16 if use_bf16_matmul else 8
    k_aug = kh * kw * cin
    kp = ((k_aug + sublane - 1) // sublane) * sublane

    # --- wrapper-side im2col in NCHW, cast to operand dtype up-front ---------
    # TODO(synk): replace with in-kernel per-tap accumulation for large Cin/H/W.
    xp = jnp.pad(x_nchw.astype(op_dtype),
                 ((0, 0), (0, 0), (padding, padding), (padding, padding)))
    taps = [xp[:, :, i:i + ho, j:j + wo].reshape(n, cin, hw)
            for i in range(kh) for j in range(kw)]
    patches = jnp.concatenate(taps, axis=1)                       # (N, K, HW)
    patches = jnp.pad(patches, ((0, 0), (0, kp - k_aug), (0, hwp - hw)))

    # Conv weight as (Cout, Kp); bias handled separately in f32 inside kernel.
    w_mat = jnp.transpose(conv_w, (0, 2, 3, 1)).reshape(cout, k_aug)
    w_mat = jnp.pad(w_mat, ((0, 0), (0, kp - k_aug))).astype(op_dtype)

    # Packed per-channel params: gamma, beta, conv bias.
    params = jnp.stack([gn_w, gn_b, conv_b], axis=1).astype(jnp.float32)  # (Cout,3)

    nb = 1 if batch_grid else n
    kernel = functools.partial(_convblock_kernel, eps=eps, hw_valid=hw, hwp=hwp,
                               nb=nb)

    itemsize = jnp.dtype(op_dtype).itemsize
    out_itemsize = jnp.dtype(x_nchw.dtype).itemsize
    cost = pl.CostEstimate(
        flops=int(2 * cout * kp * n * hwp),
        transcendentals=int(n),
        bytes_accessed=int(n * kp * hwp * itemsize + cout * kp * itemsize
                           + cout * 3 * 4 + n * cout * hwp * out_itemsize),
    )

    if batch_grid:
        # One sample per grid step; "parallel" so v4/v7x shard across TCs.
        out = pl.pallas_call(
            kernel,
            out_shape=jax.ShapeDtypeStruct((n, cout, hwp), x_nchw.dtype),
            grid_spec=pltpu.PrefetchScalarGridSpec(
                num_scalar_prefetch=0,
                grid=(n,),
                in_specs=[
                    pl.BlockSpec((None, kp, hwp), lambda i: (i, 0, 0)),
                    pl.BlockSpec((cout, kp), lambda i: (0, 0)),
                    pl.BlockSpec((cout, 3), lambda i: (0, 0)),
                ],
                out_specs=pl.BlockSpec((None, cout, hwp), lambda i: (i, 0, 0)),
            ),
            compiler_params=pltpu.CompilerParams(
                dimension_semantics=("parallel",)),
            cost_estimate=cost,
        )(patches, w_mat, params)
        if hwp > hw:
            out = out[:, :, :hw]
        return out.reshape(n, cout, ho, wo)

    # Single grid step: fold batch into the lane axis -> (Kp, N*HWp).
    patches_flat = jnp.transpose(patches, (1, 0, 2)).reshape(kp, n * hwp)
    out = pl.pallas_call(
        kernel,
        out_shape=jax.ShapeDtypeStruct((cout, n * hwp), x_nchw.dtype),
        grid_spec=pltpu.PrefetchScalarGridSpec(
            num_scalar_prefetch=0,
            grid=(1,),
            in_specs=[
                pl.BlockSpec((kp, n * hwp), lambda i: (0, 0)),
                pl.BlockSpec((cout, kp), lambda i: (0, 0)),
                pl.BlockSpec((cout, 3), lambda i: (0, 0)),
            ],
            out_specs=pl.BlockSpec((cout, n * hwp), lambda i: (0, 0)),
        ),
        compiler_params=pltpu.CompilerParams(
            dimension_semantics=("arbitrary",)),
        cost_estimate=cost,
    )(patches_flat, w_mat, params)
    out = out.reshape(cout, n, hwp)
    if hwp > hw:
        out = out[:, :, :hw]
    return jnp.transpose(out, (1, 0, 2)).reshape(n, cout, ho, wo)


def _reference(x_nchw, conv_w, conv_b, gn_w, gn_b, padding, eps=1e-5):
    y = jax.lax.conv_general_dilated(
        x_nchw, conv_w, window_strides=(1, 1),
        padding=[(padding, padding), (padding, padding)],
        dimension_numbers=("NCHW", "OIHW", "NCHW"),
    ) + conv_b[None, :, None, None]
    mean = jnp.mean(y, axis=(1, 2, 3), keepdims=True)
    var = jnp.mean((y - mean) ** 2, axis=(1, 2, 3), keepdims=True)
    y = (y - mean) * jax.lax.rsqrt(var + eps)
    y = y * gn_w[None, :, None, None] + gn_b[None, :, None, None]
    return jnp.maximum(y, 0.0)


if __name__ == "__main__":
    # ConvBlock(in_channels=4, out_channels=8, kernel_size=3, padding=1)
    in_channels, out_channels, kernel_size = 4, 8, 3
    batch, height, width = 2, 16, 16

    key = jax.random.PRNGKey(0)
    k_x, k_w, k_b, k_gw, k_gb = jax.random.split(key, 5)

    x = jax.random.normal(k_x, (batch, in_channels, height, width), jnp.float32)
    conv_w = jax.random.normal(
        k_w, (out_channels, in_channels, kernel_size, kernel_size), jnp.float32
    ) * 0.1
    conv_b = jax.random.normal(k_b, (out_channels,), jnp.float32) * 0.1
    gn_w = 1.0 + 0.1 * jax.random.normal(k_gw, (out_channels,), jnp.float32)
    gn_b = 0.1 * jax.random.normal(k_gb, (out_channels,), jnp.float32)

    # (use_bf16, batch_grid, padding, tolerance).  padding=0 gives a 14x14
    # output (196 lanes) and exercises the masked-stats branch.
    cases = [
        (False, False, 1, 1e-3),   # f32 operands, batch folded into lanes
        (False, True, 1, 1e-3),    # f32 operands, per-sample grid (v4/v7x path)
        (True, False, 1, 2e-2),    # bf16 operands (default perf path)
        (False, False, 0, 1e-3),   # non-128-aligned Ho*Wo (masked stats)
    ]
    for use_bf16, batch_grid, pad, tol in cases:
        out = conv_block_forward(x, conv_w, conv_b, gn_w, gn_b, padding=pad,
                                 use_bf16_matmul=use_bf16, batch_grid=batch_grid)
        out = jax.block_until_ready(out)
        ref = _reference(x, conv_w, conv_b, gn_w, gn_b, pad)
        np.testing.assert_allclose(np.asarray(out), np.asarray(ref),
                                   rtol=tol, atol=tol)

    # Also exercise the default auto-selected path (bf16 + device-based grid).
    out = jax.block_until_ready(
        conv_block_forward(x, conv_w, conv_b, gn_w, gn_b, padding=1))
    ref = _reference(x, conv_w, conv_b, gn_w, gn_b, 1)
    np.testing.assert_allclose(np.asarray(out), np.asarray(ref),
                               rtol=2e-2, atol=2e-2)

    print("KERNEL_OK")
</pallas_src>

<mosaic_0001>
module attributes {stable_mosaic.version = 11 : i64} {
  func.func @_convblock_kernel(%arg0: i32, %arg1: memref<40x512xf32, #tpu.memory_space<vmem>>, %arg2: memref<8x40xf32, #tpu.memory_space<vmem>>, %arg3: memref<8x3xf32, #tpu.memory_space<vmem>>, %arg4: memref<8x512xf32, #tpu.memory_space<vmem>>) attributes {dimension_semantics = [#tpu.dimension_semantics<arbitrary>], iteration_bounds = array<i64: 1>, scalar_prefetch = 0 : i64, scratch_operands = 0 : i64, tpu.core_type = #tpu.core_type<tc>, window_params = [{pipeline_mode = #tpu.pipeline_mode<synchronous>, transform_indices = @transform_0, window_bounds = array<i64: 40, 512>}, {pipeline_mode = #tpu.pipeline_mode<synchronous>, transform_indices = @transform_1, window_bounds = array<i64: 8, 40>}, {pipeline_mode = #tpu.pipeline_mode<synchronous>, transform_indices = @transform_2, window_bounds = array<i64: 8, 3>}, {pipeline_mode = #tpu.pipeline_mode<synchronous>, transform_indices = @transform_3, window_bounds = array<i64: 8, 512>}]} {
    %c0 = arith.constant 0 : index
    %c0_0 = arith.constant 0 : index
    %0 = vector.load %arg2[%c0, %c0_0] : memref<8x40xf32, #tpu.memory_space<vmem>>, vector<8x40xf32>
    %c0_1 = arith.constant 0 : index
    %c0_2 = arith.constant 0 : index
    %1 = vector.load %arg1[%c0_1, %c0_2] : memref<40x512xf32, #tpu.memory_space<vmem>>, vector<40x512xf32>
    %cst = arith.constant dense<0.000000e+00> : vector<8x512xf32>
    %2 = tpu.matmul %0, %1, %cst {dimension_numbers = #tpu.dot_dimension_numbers<[1], [0], [0], [1], [0, 0, 1, 1], [], []>} : vector<8x40xf32>, vector<40x512xf32>, vector<8x512xf32> -> vector<8x512xf32>
    %c0_3 = arith.constant 0 : index
    %c0_4 = arith.constant 0 : index
    %3 = vector.load %arg3[%c0_3, %c0_4] : memref<8x3xf32, #tpu.memory_space<vmem>>, vector<8x1xf32>
    %c0_5 = arith.constant 0 : index
    %c1 = arith.constant 1 : index
    %4 = vector.load %arg3[%c0_5, %c1] : memref<8x3xf32, #tpu.memory_space<vmem>>, vector<8x1xf32>
    %c0_6 = arith.constant 0 : index
    %c2 = arith.constant 2 : index
    %5 = vector.load %arg3[%c0_6, %c2] : memref<8x3xf32, #tpu.memory_space<vmem>>, vector<8x1xf32>
    %6 = vector.broadcast %5 : vector<8x1xf32> to vector<8x512xf32>
    %7 = arith.addf %2, %6 : vector<8x512xf32>
    %8 = vector.extract_strided_slice %7 {offsets = [0, 0], sizes = [8, 256], strides = [1, 1]} : vector<8x512xf32> to vector<8x256xf32>
    %9 = vector.shape_cast %8 : vector<8x256xf32> to vector<1x8x256xf32>
    %cst_7 = arith.constant dense<0.000000e+00> : vector<1xf32>
    %10 = vector.multi_reduction <add>, %9, %cst_7 [1, 2] : vector<1x8x256xf32> to vector<1xf32>
    %11 = vector.shape_cast %10 : vector<1xf32> to vector<1x1x1xf32>
    %12 = vector.extract %11[0, 0, 0] : f32 from vector<1x1x1xf32>
    %cst_8 = arith.constant 2.048000e+03 : f32
    %13 = arith.divf %12, %cst_8 : f32
    %14 = vector.broadcast %13 : f32 to vector<8x256xf32>
    %15 = arith.subf %8, %14 : vector<8x256xf32>
    %16 = arith.mulf %15, %15 : vector<8x256xf32>
    %17 = vector.shape_cast %16 : vector<8x256xf32> to vector<1x8x256xf32>
    %cst_9 = arith.constant dense<0.000000e+00> : vector<1xf32>
    %18 = vector.multi_reduction <add>, %17, %cst_9 [1, 2] : vector<1x8x256xf32> to vector<1xf32>
    %19 = vector.shape_cast %18 : vector<1xf32> to vector<1x1x1xf32>
    %20 = vector.extract %19[0, 0, 0] : f32 from vector<1x1x1xf32>
    %cst_10 = arith.constant 2.048000e+03 : f32
    %21 = arith.divf %20, %cst_10 : f32
    %cst_11 = arith.constant 9.99999974E-6 : f32
    %22 = arith.addf %21, %cst_11 : f32
    %23 = math.rsqrt %22 : f32
    %24 = vector.broadcast %23 : f32 to vector<8x256xf32>
    %25 = arith.mulf %15, %24 : vector<8x256xf32>
    %26 = vector.broadcast %3 : vector<8x1xf32> to vector<8x256xf32>
    %27 = arith.mulf %25, %26 : vector<8x256xf32>
    %28 = vector.broadcast %4 : vector<8x1xf32> to vector<8x256xf32>
    %29 = arith.addf %27, %28 : vector<8x256xf32>
    %cst_12 = arith.constant 0.000000e+00 : f32
    %30 = vector.broadcast %cst_12 : f32 to vector<8x256xf32>
    %31 = arith.maximumf %29, %30 : vector<8x256xf32>
    %c0_13 = arith.constant 0 : index
    %c0_14 = arith.constant 0 : index
    %32 = vector.load %arg4[%c0_13, %c0_14] : memref<8x512xf32, #tpu.memory_space<vmem>>, vector<8x256xf32>
    tpu.vector_store %arg4[%c0_13, %c0_14], %31 {strides = array<i32>} : memref<8x512xf32, #tpu.memory_space<vmem>>, vector<8x256xf32>,
    %33 = vector.extract_strided_slice %7 {offsets = [0, 256], sizes = [8, 256], strides = [1, 1]} : vector<8x512xf32> to vector<8x256xf32>
    %34 = vector.shape_cast %33 : vector<8x256xf32> to vector<1x8x256xf32>
    %cst_15 = arith.constant dense<0.000000e+00> : vector<1xf32>
    %35 = vector.multi_reduction <add>, %34, %cst_15 [1, 2] : vector<1x8x256xf32> to vector<1xf32>
    %36 = vector.shape_cast %35 : vector<1xf32> to vector<1x1x1xf32>
    %37 = vector.extract %36[0, 0, 0] : f32 from vector<1x1x1xf32>
    %cst_16 = arith.constant 2.048000e+03 : f32
    %38 = arith.divf %37, %cst_16 : f32
    %39 = vector.broadcast %38 : f32 to vector<8x256xf32>
    %40 = arith.subf %33, %39 : vector<8x256xf32>
    %41 = arith.mulf %40, %40 : vector<8x256xf32>
    %42 = vector.shape_cast %41 : vector<8x256xf32> to vector<1x8x256xf32>
    %cst_17 = arith.constant dense<0.000000e+00> : vector<1xf32>
    %43 = vector.multi_reduction <add>, %42, %cst_17 [1, 2] : vector<1x8x256xf32> to vector<1xf32>
    %44 = vector.shape_cast %43 : vector<1xf32> to vector<1x1x1xf32>
    %45 = vector.extract %44[0, 0, 0] : f32 from vector<1x1x1xf32>
    %cst_18 = arith.constant 2.048000e+03 : f32
    %46 = arith.divf %45, %cst_18 : f32
    %cst_19 = arith.constant 9.99999974E-6 : f32
    %47 = arith.addf %46, %cst_19 : f32
    %48 = math.rsqrt %47 : f32
    %49 = vector.broadcast %48 : f32 to vector<8x256xf32>
    %50 = arith.mulf %40, %49 : vector<8x256xf32>
    %51 = vector.broadcast %3 : vector<8x1xf32> to vector<8x256xf32>
    %52 = arith.mulf %50, %51 : vector<8x256xf32>
    %53 = vector.broadcast %4 : vector<8x1xf32> to vector<8x256xf32>
    %54 = arith.addf %52, %53 : vector<8x256xf32>
    %cst_20 = arith.constant 0.000000e+00 : f32
    %55 = vector.broadcast %cst_20 : f32 to vector<8x256xf32>
    %56 = arith.maximumf %54, %55 : vector<8x256xf32>
    %c0_21 = arith.constant 0 : index
    %c256 = arith.constant 256 : index
    %57 = vector.load %arg4[%c0_21, %c256] : memref<8x512xf32, #tpu.memory_space<vmem>>, vector<8x256xf32>
    tpu.vector_store %arg4[%c0_21, %c256], %56 {strides = array<i32>} : memref<8x512xf32, #tpu.memory_space<vmem>>, vector<8x256xf32>,
    return
  }
  func.func @transform_0(%arg0: i32) -> (i32, i32) {
    %c0_i32 = arith.constant 0 : i32
    %c0_i32_0 = arith.constant 0 : i32
    %c0_i32_1 = arith.constant 0 : i32
    return %c0_i32, %c0_i32_0 : i32, i32
  }
  func.func @transform_1(%arg0: i32) -> (i32, i32) {
    %c0_i32 = arith.constant 0 : i32
    %c0_i32_0 = arith.constant 0 : i32
    %c0_i32_1 = arith.constant 0 : i32
    return %c0_i32, %c0_i32_0 : i32, i32
  }
  func.func @transform_2(%arg0: i32) -> (i32, i32) {
    %c0_i32 = arith.constant 0 : i32
    %c0_i32_0 = arith.constant 0 : i32
    %c0_i32_1 = arith.constant 0 : i32
    return %c0_i32, %c0_i32_0 : i32, i32
  }
  func.func @transform_3(%arg0: i32) -> (i32, i32) {
    %c0_i32 = arith.constant 0 : i32
    %c0_i32_0 = arith.constant 0 : i32
    %c0_i32_1 = arith.constant 0 : i32
    return %c0_i32, %c0_i32_0 : i32, i32
  }
}

</mosaic_0001>

<bundles_post_ra>
// kernel: tpu_custom_call.1
= control target key start
LH: loop header
LB: loop body
LE: loop exit
PB: predicated region body
PF: predicated region fallthrough
CT: control target
= control target key end

     0   :  { %8 = vsyncpa [#allocation3], 0  ;;  %s474_s0 = inlined_call_operand.hbm [shape: f32[40,512], index: 0, kind: input, shape index: {}]   ;;  %s475_s1 = inlined_call_operand.vmem [shape: f32[8,40], index: 1, kind: input, shape index: {}]   ;;  %s476_s2 = inlined_call_operand.vmem [shape: f32[8,3], index: 2, kind: input, shape index: {}]   ;;  %s477_s3 = inlined_call_operand.hbm [shape: f32[8,512], index: 3, kind: output, shape index: {}]  }
   0x1   :  { %9 = vsyncpa [#allocation4], 0  ;;  %s411_s12 = smov [#allocation2]   ;;  %s363_s16 = scalar_lea.hbm %s474_s0, 2560 }
   0x2   :  { %s15_s13 = sshll.u32 %s411_s12, 4  ;;  %p364_p0 = scmp.ne.s32.totalorder %s474_s0, %s363_s16  ;;  %s16_s13 = int_to_ptr.vmem [resolvable:$true] %s15_s13 }
   0x3   :  { %p367_p1 = scmp.lt.u32.totalorder %s363_s16, %s474_s0 }
   0x5   :  { %p369_p2 = pnand %p367_p1, %p364_p0 }
   0x7   :  { %372 = shalt.err (!%p369_p2)
}
   0x8   :  { %s373_s21 = scalar_lea.vmem %s16_s13, 2560  ;;  %p378_p4 = scmp.lt.s32.totalorder %s16_s13, %s16_s13 }
   0x9   :  { %p374_p3 = scmp.ne.s32.totalorder %s16_s13, %s373_s21  ;;  %p379_p5 = scmp.lt.s32.totalorder %s373_s21, %s373_s21 }
   0xb   :  { %p380_p6 = por %p379_p5, %p378_p4 }
   0xd   :  { %p381_p7 = pnand %p380_p6, %p374_p3 }
   0xf   :  { %384 = shalt.err (!%p381_p7)
}
  0x10   :  { %s412_s22 = smov 512   ;;  %s413_s23 = smov 32  }
  0x11   :  { %21 = dma.hbm_to_vmem [thread:$0]  %s474_s0, 2560, %s16_s13, [#allocation3], %s412_s22, %s412_s22, %s413_s23  }
  0x12   :  { %407 = dma.done.wait [#allocation3], 2560  }
  0x13   :  { %408 = vsyncadd [#allocation3], 4294964736  ;;  %v414_v0 = vmov 0.0   ;;  %v415_v1 = vmov 2   ;;  %v31_v2 = vld [vmem:[#allocation2 + $0x8] sm:$0xff]  ;;  %v33_v4 = vld [vmem:[#allocation2 + $0x18] sm:$0xff] }
  0x14   :  { %124 = vmatprep.mubr.f32.mxu0 %v414_v0  ;;  %195 = vmatprep.mubr.f32.mxu1 %v414_v0  ;;  %v35_v3 = vld [vmem:[#allocation2 + $0x28] sm:$0xff]  ;;  %v37_v6 = vld [vmem:[#allocation2 + $0x38] sm:$0xff]  ;;  %v30_v7 = vld [vmem:[#allocation2] sm:$0xff]  ;;  %vm56_vm0 = vcmask 326656   ;;  %v416_v63 = vmov 0   ;;  %v417_v0 = vmov 1  }
  0x15   :  { %355 = vset.pattern.permute.xlu0 %v415_v1  ;;  %v319_v5 = vpack.c.bf16 %v35_v3, %v31_v2  ;;  %v34_v8 = vld [vmem:[#allocation2 + $0x20] sm:$0xff]  ;;  %v327_v9 = vpack.c.bf16 %v37_v6, %v33_v4  ;;  %v32_v11 = vld [vmem:[#allocation2 + $0x10] sm:$0xff]  ;;  %v39_v13 = vld [vmem:[#allocation2 + $0x48] sm:$0xff]  ;;  %356 = vset.pattern.permute.xlu1 %v416_v63  ;;  %s418_s12 = smov [#allocation5]  }
  0x16   :  { %v321_v10 = vpack.c.bf16 %v34_v8, %v30_v7  ;;  %v36_v12 = vld [vmem:[#allocation2 + $0x30] sm:$0xff]  ;;  %v43_v15 = vld [vmem:[#allocation2 + $0x68] sm:$0xff]  ;;  %v41_v16 = vld [vmem:[#allocation2 + $0x58] sm:$0xff]  ;;  %s308_s13 = sshll.u32 %s418_s12, 4  ;;  %s309_s13 = int_to_ptr.vmem [resolvable:$true] %s308_s13 }
  0x17   :  { %320 = vmatprep.subr.bf16.mxu0 %v319_v5  ;;  %v329_v14 = vpack.c.bf16 %v36_v12, %v32_v11  ;;  %v45_v17 = vld [vmem:[#allocation2 + $0x78] sm:$0xff]  ;;  %328 = vmatprep.subr.bf16.mxu1 %v327_v9  ;;  %v323_v18 = vpack.c.bf16 %v43_v15, %v39_v13  ;;  %v38_v20 = vld [vmem:[#allocation2 + $0x40] sm:$0xff]  ;;  %v40_v22 = vld [vmem:[#allocation2 + $0x50] sm:$0xff]  ;;  %s385_s14 = scalar_lea.vmem %s309_s13, 512  ;;  %p390_p9 = scmp.lt.s32.totalorder %s309_s13, %s309_s13 }
  0x18   :  { %322 = vmatpush1.bf16.msra.mxu0 %v321_v10  ;;  %v331_v19 = vpack.c.bf16 %v45_v17, %v41_v16  ;;  %v42_v21 = vld [vmem:[#allocation2 + $0x60] sm:$0xff]  ;;  %v44_v24 = vld [vmem:[#allocation2 + $0x70] sm:$0xff]  ;;  %v47_v26 = vld [vmem:[#allocation2 + $0x88] sm:$0xff]  ;;  %p386_p8 = scmp.ne.s32.totalorder %s309_s13, %s385_s14  ;;  %p391_p10 = scmp.lt.s32.totalorder %s385_s14, %s385_s14 }
  0x19   :  { %330 = vmatpush1.bf16.msra.mxu1 %v329_v14  ;;  %v325_v23 = vpack.c.bf16 %v42_v21, %v38_v20  ;;  %324 = vmatprep.subr.bf16.mxu0 %v323_v18  ;;  %v333_v25 = vpack.c.bf16 %v44_v24, %v40_v22  ;;  %v49_v27 = vld [vmem:[#allocation2 + $0x98] sm:$0xff]  ;;  %v454_v28 = vld [vmem:[%s476_s2] sm:$0xff]  ;;  %v48_v30 = vld [vmem:[#allocation2 + $0x90] sm:$0xff] }
  0x1a   :  { %332 = vmatprep.subr.bf16.mxu1 %v331_v19  ;;  %53 = vperm.xlu0 %355, %v454_v28   ;;  %v46_v29 = vld [vmem:[#allocation2 + $0x80] sm:$0xff]  ;;  %p392_p11 = por %p391_p10, %p390_p9 }
  0x1b   :  { %v29_v31 = vld [vmem:[%s475_s1] sm:$0xff] }
  0x1c   :  { %326 = vmatpush1.bf16.msra.mxu0 %v325_v23  ;;  %p393_p12 = pnand %p392_p11, %p386_p8 }
  0x1d   :  { %334 = vmatpush1.bf16.msra.mxu1 %v333_v25  ;;  %68 = vmatprep.subr.mxu0 %v47_v26 }
  0x1e   :  { %139 = vmatprep.subr.mxu1 %v49_v27  ;;  %358 = vset.pattern.permute.xlu0 %v417_v0 }
  0x20   :  { %69 = vmatpush1.msra.mxu0 %v46_v29 }
  0x21   :  { %140 = vmatpush1.msra.mxu1 %v48_v30  ;;  %317 = vmatmul.mubr.msk.f32.vlgmr.msra.gmra.mrb[0].mxu0 %vm56_vm0, %v29_v31 }
  0x22   :  { %318 = vmatmul.mubr.msk.f32.vlgmr.msra.gmra.mrb[0].mxu1 %vm56_vm0, %v29_v31 }
  0x99   :  { %v54_v32 = vpop.permute.xlu0 %53 }
  0xf4   :  { %v126_v33 = vpop.f32.mrb[0].mxu0 }
  0xf5   :  { %v127_v34 = vadd.f32 %v126_v33, %v54_v32  ;;  %v197_v35 = vpop.f32.mrb[0].mxu1  ;;  %v128_v36 = vpop.f32.mrb[1].mxu0 }
  0xf6   :  { %v129_v37 = vadd.f32 %v128_v36, %v54_v32  ;;  %v199_v38 = vpop.f32.mrb[1].mxu1  ;;  %v198_v52 = vadd.f32 %v197_v35, %v54_v32 }
  0xf7   :  { %v200_v53 = vadd.f32 %v199_v38, %v54_v32 }
  0xf8   :  { %v202_v39 = vadd.f32 %v129_v37, %v127_v34 }
  0xf9   :  { %v256_v55 = vadd.f32 %v200_v53, %v198_v52 }
  0xfa   :  { %203 = vadd.xlane.f32.xlu0 %v202_v39 }
 0x187   :  { %v204_v40 = vpop.xlane.xlu0 %203 }
 0x188   :  { %v205_v41 = vrot.slane %v204_v40, 4 }
 0x18a   :  { %v206_v42 = vadd.f32 %v205_v41, %v204_v40 }
 0x18c   :  { %v207_v43 = vrot.slane %v206_v42, 2 }
 0x18e   :  { %v208_v44 = vadd.f32 %v207_v43, %v206_v42 }
 0x190   :  { %v209_v45 = vrot.slane %v208_v44, 1 }
 0x192   :  { %v210_v46 = vadd.f32 %v209_v45, %v208_v44 }
 0x194   :  { %335 = vpush %v210_v46 }
 0x1c5   :  { %s336_s1 = spop %335 }
 0x1c6   :  { %s214_s2 = smul.f32 0.00048828125, %s336_s1 }
 0x1c8   :  { %v215_v47 = vstv %s214_s2 }
 0x1c9   :  { %v216_v48 = vsub.f32 %v127_v34, %v215_v47  ;;  %v217_v49 = vsub.f32 %v129_v37, %v215_v47 }
 0x1cb   :  { %v218_v50 = vmul.f32 %v216_v48, %v216_v48  ;;  %v219_v51 = vmul.f32 %v217_v49, %v217_v49 }
 0x1cd   :  { %v220_v54 = vadd.f32 %v219_v51, %v218_v50 }
 0x1cf   :  { %221 = vadd.xlane.f32.xlu1 %v220_v54 }
 0x1d3   :  { %257 = vadd.xlane.f32.xlu1 %v256_v55 }
 0x25c   :  { %v222_v56 = vpop.xlane.xlu1 %221 }
 0x25d   :  { %v223_v57 = vrot.slane %v222_v56, 4 }
 0x25f   :  { %v224_v58 = vadd.f32 %v223_v57, %v222_v56 }
 0x260   :  { %v258_v1 = vpop.xlane.xlu1 %257 }
 0x261   :  { %v225_v59 = vrot.slane %v224_v58, 2  ;;  %v259_v2 = vrot.slane %v258_v1, 4 }
 0x263   :  { %v226_v60 = vadd.f32 %v225_v59, %v224_v58  ;;  %v260_v3 = vadd.f32 %v259_v2, %v258_v1 }
 0x265   :  { %v227_v61 = vrot.slane %v226_v60, 1  ;;  %v261_v4 = vrot.slane %v260_v3, 2 }
 0x267   :  { %v228_v62 = vadd.f32 %v227_v61, %v226_v60  ;;  %v262_v6 = vadd.f32 %v261_v4, %v260_v3 }
 0x269   :  { %337 = vpush %v228_v62  ;;  %v263_v7 = vrot.slane %v262_v6, 1 }
 0x26b   :  { %v264_v9 = vadd.f32 %v263_v7, %v262_v6 }
 0x29a   :  { %s338_s29 = spop %337 }
 0x29b   :  { %s232_s30 = smul.f32 0.00048828125, %s338_s29 }
 0x29d   :  { %s233_s4 = sadd.f32 1e-05, %s232_s30 }
 0x29f   :  { %v234_v5 = vstv %s233_s4 }
 0x2a0   :  { %359 = vrsqrt.f32 %v234_v5 }
 0x2aa   :  { %v360_v8 = vpop.eup %359 }
 0x2ab   :  { %339 = vpush %v360_v8 }
 0x2ac   :  { %341 = vpush %v264_v9 }
 0x2dc   :  { %s340_s5 = spop %339 }
 0x2dd   :  { %s342_s6 = spop %341  ;;  %v237_v18 = vstv %s340_s5 }
 0x2de   :  { %s268_s7 = smul.f32 0.00048828125, %s342_s6  ;;  %v238_v21 = vmul.f32 %v237_v18, %v216_v48  ;;  %v239_v22 = vmul.f32 %v237_v18, %v217_v49 }
 0x2e0   :  { %v269_v10 = vstv %s268_s7 }
 0x2e1   :  { %v270_v11 = vsub.f32 %v198_v52, %v269_v10  ;;  %v271_v12 = vsub.f32 %v200_v53, %v269_v10 }
 0x2e3   :  { %v272_v13 = vmul.f32 %v270_v11, %v270_v11  ;;  %v273_v14 = vmul.f32 %v271_v12, %v271_v12 }
 0x2e5   :  { %v274_v15 = vadd.f32 %v273_v14, %v272_v13 }
 0x2e7   :  { %275 = vadd.xlane.f32.xlu1 %v274_v15 }
 0x2f8   :  { %241 = vperm.xlu1 %356, %v454_v28  }
 0x2fc   :  { %357 = vset.pattern.permute.xlu1 %v417_v0 }
 0x2fd   :  { %247 = vperm.xlu1 %357, %v454_v28  }
 0x374   :  { %v276_v16 = vpop.xlane.xlu1 %275 }
 0x375   :  { %v277_v17 = vrot.slane %v276_v16, 4 }
 0x377   :  { %v278_v19 = vadd.f32 %v277_v17, %v276_v16 }
 0x378   :  { %v242_v20 = vpop.permute.xlu1 %241 }
 0x379   :  { %v279_v23 = vrot.slane %v278_v19, 2  ;;  %v244_v24 = vmul.f32 %v242_v20, %v238_v21  ;;  %v245_v25 = vmul.f32 %v242_v20, %v239_v22 }
 0x37b   :  { %v280_v26 = vadd.f32 %v279_v23, %v278_v19 }
 0x37c   :  { %v248_v27 = vpop.permute.xlu1 %247 }
 0x37d   :  { %v250_v29 = vadd.f32 %v248_v27, %v244_v24  ;;  %v251_v30 = vadd.f32 %v248_v27, %v245_v25  ;;  %v281_v31 = vrot.slane %v280_v26, 1 }
 0x37f   :  { %v252_v32 = vmax.f32 %v250_v29, 0.0  ;;  %v253_v33 = vmax.f32 %v251_v30, 0.0  ;;  %v282_v34 = vadd.f32 %v281_v31, %v280_v26 }
 0x381   :  { %254 = vst [vmem:[#allocation5] sm:$0xff] %v252_v32  ;;  %255 = vst [vmem:[#allocation5 + $0x8] sm:$0xff] %v253_v33 }
 0x382   :  { %343 = vpush %v282_v34 }
 0x3b3   :  { %s344_s8 = spop %343 }
 0x3b4   :  { %s286_s9 = smul.f32 0.00048828125, %s344_s8 }
 0x3b6   :  { %s287_s10 = sadd.f32 1e-05, %s286_s9 }
 0x3b8   :  { %v288_v28 = vstv %s287_s10 }
 0x3b9   :  { %361 = vrsqrt.f32 %v288_v28 }
 0x3c3   :  { %v362_v35 = vpop.eup %361 }
 0x3c4   :  { %345 = vpush %v362_v35 }
 0x3f5   :  { %s346_s11 = spop %345 }
 0x3f6   :  { %v291_v36 = vstv %s346_s11 }
 0x3f7   :  { %v292_v37 = vmul.f32 %v291_v36, %v270_v11  ;;  %v293_v38 = vmul.f32 %v291_v36, %v271_v12 }
 0x3f9   :  { %v294_v39 = vmul.f32 %v292_v37, %v242_v20  ;;  %v295_v40 = vmul.f32 %v293_v38, %v242_v20 }
 0x3fb   :  { %v296_v41 = vadd.f32 %v294_v39, %v248_v27  ;;  %v297_v42 = vadd.f32 %v295_v40, %v248_v27 }
 0x3fd   :  { %v298_v43 = vmax.f32 %v296_v41, 0.0  ;;  %v299_v44 = vmax.f32 %v297_v42, 0.0 }
 0x3ff   :  { %300 = vst [vmem:[#allocation5 + $0x10] sm:$0xff] %v298_v43  ;;  %301 = vst [vmem:[#allocation5 + $0x18] sm:$0xff] %v299_v44 }
 0x400   :  { %396 = shalt.err (!%p393_p12)
}
 0x401   :  { %s397_s17 = scalar_lea.hbm %s477_s3, 512 }
 0x402   :  { %p398_p13 = scmp.ne.s32.totalorder %s477_s3, %s397_s17  ;;  %p401_p0 = scmp.lt.u32.totalorder %s397_s17, %s477_s3 }
 0x404   :  { %p403_p1 = pnand %p401_p0, %p398_p13 }
 0x406   :  { %406 = shalt.err (!%p403_p1)
}
 0x407   :  { %311 = dma.vmem_to_hbm [thread:$0]  %s309_s13, 512, %s477_s3, [#allocation4]  }
 0x408   :  { %409 = dma.done.wait [#allocation4], 512  }
 0x409   :  { %410 = vsyncadd [#allocation4], 4294966784 }
 0x40a   :  { %315 = vsyncpa [#allocation3], 1 }
 0x40b   :  { %316 = vsyncpa [#allocation4], 1 }

</bundles_post_ra>
